<compile_context>
chip_gen: v7x
topology: tpu7x:2x2x1
jax: 0.10.0
libtpu: 0.0.40
codegen_flags: <defaults>
</compile_context>

<pallas_src>
import functools

import jax
import jax.numpy as jnp
from jax.experimental import pallas as pl
from jax.experimental.pallas import tpu as pltpu


# --- dispatch thresholds (static Python values) ------------------------------
_SMALL_OUTPUT_BYTES = 1 << 20      # below this, XLA's native slice wins
_MIN_DMA_INNER_BYTES = 512         # below this, strided HBM DMA is
                                   # descriptor/row-rate bound -> stage in VMEM
_MAX_VMEM_TAIL_BYTES = 12 << 20    # 2 buffers x (in tile + out tile) must fit
                                   # comfortably in v7x's scoped VMEM
_MAX_DMA_CHUNKS = 8                # total concurrent DMAs across groups
_NUM_DMA_GROUPS = 2                # grid programs (v7x: one per TensorCore)


def _split(total, parts):
    """Split `total` rows into `parts` roughly equal (offset, length) pieces."""
    parts = max(1, min(parts, total))
    base, rem = divmod(total, parts)
    bounds = []
    off = 0
    for i in range(parts):
        n = base + (1 if i < rem else 0)
        bounds.append((off, n))
        off += n
    return tuple(bounds)


def _collapse_dims(shape, pad_width):
    """Merge adjacent unpadded dims and fold trailing unpadded dims into the
    last padded dim.  All values are static Python ints (trace-time)."""
    groups = []  # (size, lpad, rpad)
    for d, (l, r) in zip(shape, pad_width):
        if l == 0 and r == 0 and groups and groups[-1][1] == 0 and groups[-1][2] == 0:
            groups[-1] = (groups[-1][0] * d, 0, 0)
        else:
            groups.append((d, l, r))
    if len(groups) >= 2 and groups[-1][1] == 0 and groups[-1][2] == 0:
        t = groups[-1][0]
        d, l, r = groups[-2]
        groups[-2] = (d * t, l * t, r * t)
        groups.pop()
    new_shape = tuple(g[0] for g in groups)
    new_pads = tuple((g[1], g[2]) for g in groups)
    return new_shape, new_pads


# --- kernels ------------------------------------------------------------------
def _unpad_dma_kernel(starts, sizes, chunk_groups, x_ref, o_ref, sems):
    """Concurrent strided HBM->HBM copies of the un-padded interior.

    x_ref / o_ref live in HBM (memory_space=pl.ANY).  All offsets/sizes are
    static Python ints folded into the DMA descriptors; nothing is staged in
    VMEM and no vector work is issued.  chunk_groups[g] is the tuple of
    (row_offset, row_count) chunks (along dim 0 of the interior) handled by
    grid program g; all of a group's DMAs are in flight before the first wait.
    """
    tail = tuple(pl.ds(s, n) for s, n in zip(starts[1:], sizes[1:]))
    for g, group in enumerate(chunk_groups):

        @pl.when(pl.program_id(0) == g)
        def _(group=group):
            copies = []
            for j, (off, rows) in enumerate(group):
                src = x_ref.at[(pl.ds(starts[0] + off, rows),) + tail]
                dst = o_ref.at[pl.ds(off, rows)]
                cp = pltpu.make_async_copy(src, dst, sems.at[j])
                cp.start()
                copies.append(cp)
            for cp in copies:      # all chunk DMAs outstanding before waiting
                cp.wait()


def _unpad_vmem_kernel(tail_starts, tail_sizes, x_ref, o_ref):
    """VMEM-staged path for narrow interiors: the BlockSpec pipeline loads the
    full padded 2-D tail tile, the interior is sliced in-register (static
    slice) and stored as the full interior tail tile."""
    nd = len(x_ref.shape)
    idx = (slice(None),) * (nd - 2) + tuple(
        slice(s, s + n) for s, n in zip(tail_starts, tail_sizes))
    o_ref[...] = x_ref[idx]
    # TODO(synk): for v5e a fully lane-dense output (flattening the output tail
    # to a multiple of 128 lanes) would avoid masked vst on sub-128 last dims;
    # it requires an in-kernel relayouting reshape and is left out for safety.


# --- module -------------------------------------------------------------------
class UnpadNd:
    """JAX/Pallas port of distdl.nn.UnpadNd (forward only).

    TODO(synk): `value` only matters for the backward pass (constant pad of the
    gradient); no custom VJP is implemented here.
    """

    def __init__(self, pad_width, value=0.0):
        pw = tuple((int(l), int(r)) for (l, r) in pad_width)
        assert all(l >= 0 and r >= 0 for (l, r) in pw), \
            "pad_width entries must be non-negative"
        self.pad_width = pw
        self.value = value

    def __call__(self, x, *, force_pallas=False):
        pad_width = self.pad_width
        assert len(pad_width) == x.ndim, "pad_width rank must match input rank"

        out_shape = tuple(d - l - r for d, (l, r) in zip(x.shape, pad_width))
        assert all(s > 0 for s in out_shape), "unpadded shape must be positive"

        if all(l == 0 and r == 0 for (l, r) in pad_width):
            return x

        itemsize = jnp.dtype(x.dtype).itemsize
        out_bytes = itemsize
        for s in out_shape:
            out_bytes *= s

        # Fast path: for tiny outputs the custom-call launch + DMA setup
        # dominates; XLA's native slice is strictly faster everywhere.
        if not force_pallas and out_bytes < _SMALL_OUTPUT_BYTES:
            return x[tuple(slice(l, d - r) for d, (l, r) in zip(x.shape, pad_width))]

        # Collapse dims: merge unpadded runs, fold trailing unpadded dims into
        # the last padded dim (bigger contiguous DMA runs, lower DMA rank).
        c_shape, c_pads = _collapse_dims(x.shape, pad_width)
        c_starts = tuple(l for (l, _) in c_pads)
        c_sizes = tuple(d - l - r for d, (l, r) in zip(c_shape, c_pads))
        xc = x.reshape(c_shape)

        inner_bytes = c_sizes[-1] * itemsize
        if len(c_shape) >= 2:
            tail_vmem_bytes = 2 * (c_shape[-2] * c_shape[-1]
                                   + c_sizes[-2] * c_sizes[-1]) * itemsize
        else:
            tail_vmem_bytes = 2 * (c_shape[-1] + c_sizes[-1]) * itemsize

        if inner_bytes >= _MIN_DMA_INNER_BYTES or tail_vmem_bytes > _MAX_VMEM_TAIL_BYTES:
            # TODO(synk): for huge tails with a narrow inner run we fall back to
            # the strided-DMA path instead of tiling the tail in VMEM.
            out_c = self._dma_path(xc, c_starts, c_sizes, out_bytes)
        else:
            out_c = self._vmem_path(xc, c_pads, c_sizes, itemsize)
        return out_c.reshape(out_shape)

    # -- wide inner run: chunked concurrent HBM->HBM DMAs ----------------------
    @staticmethod
    def _dma_path(xc, starts, sizes, out_bytes):
        rows = sizes[0]
        n_chunks = max(1, min(_MAX_DMA_CHUNKS, rows))
        n_groups = max(1, min(_NUM_DMA_GROUPS, n_chunks))
        per_group = -(-n_chunks // n_groups)  # ceil

        groups = []
        for g_off, g_rows in _split(rows, n_groups):
            groups.append(tuple((g_off + o, n) for o, n in _split(g_rows, per_group)))
        groups = tuple(groups)
        max_group = max(len(g) for g in groups)

        kernel = functools.partial(_unpad_dma_kernel, starts, sizes, groups)
        fn = pl.pallas_call(
            kernel,
            out_shape=jax.ShapeDtypeStruct(tuple(sizes), xc.dtype),
            grid=(len(groups),),
            in_specs=[pl.BlockSpec(memory_space=pl.ANY)],
            out_specs=pl.BlockSpec(memory_space=pl.ANY),
            scratch_shapes=[pltpu.SemaphoreType.DMA((max_group,))],
            compiler_params=pltpu.CompilerParams(
                dimension_semantics=("parallel",)),
            cost_estimate=pl.CostEstimate(
                flops=0, transcendentals=0, bytes_accessed=2 * out_bytes),
        )
        return fn(xc)

    # -- narrow inner run: VMEM-staged auto-pipelined slice --------------------
    @staticmethod
    def _vmem_path(xc, c_pads, c_sizes, itemsize):
        c_shape = tuple(xc.shape)
        # Guarantee a 2-D in-register "tail" plus >= 1 leading grid dim.
        n_dummy = max(0, 3 - len(c_shape))
        c_shape = (1,) * n_dummy + c_shape
        c_pads = ((0, 0),) * n_dummy + tuple(c_pads)
        c_sizes = (1,) * n_dummy + tuple(c_sizes)
        xc = xc.reshape(c_shape)

        n_lead = len(c_shape) - 2
        lead_pads = tuple(l for (l, _) in c_pads[:n_lead])
        grid = tuple(c_sizes[:n_lead])
        tail_starts = tuple(l for (l, _) in c_pads[n_lead:])
        tail_sizes = tuple(c_sizes[n_lead:])

        in_block = (1,) * n_lead + tuple(c_shape[n_lead:])   # full padded tail
        out_block = (1,) * n_lead + tail_sizes                # full interior tail

        def in_index_map(*gids):
            return tuple(g + p for g, p in zip(gids, lead_pads)) + (0, 0)

        def out_index_map(*gids):
            return tuple(gids) + (0, 0)

        read_bytes = itemsize * c_shape[-2] * c_shape[-1]
        for s in grid:
            read_bytes *= s
        write_bytes = itemsize
        for s in c_sizes:
            write_bytes *= s

        kernel = functools.partial(_unpad_vmem_kernel, tail_starts, tail_sizes)
        fn = pl.pallas_call(
            kernel,
            out_shape=jax.ShapeDtypeStruct(tuple(c_sizes), xc.dtype),
            grid=grid,
            in_specs=[pl.BlockSpec(in_block, in_index_map)],
            out_specs=pl.BlockSpec(out_block, out_index_map),
            compiler_params=pltpu.CompilerParams(
                dimension_semantics=("parallel",) * len(grid),
                vmem_limit_bytes=32 * 1024 * 1024),
            cost_estimate=pl.CostEstimate(
                flops=0, transcendentals=0,
                bytes_accessed=read_bytes + write_bytes),
        )
        return fn(xc)


# --- reference ----------------------------------------------------------------
def unpad_reference(x, pad_width):
    """Pure-JAX reference matching the PyTorch/numpy slicing semantics."""
    slices = tuple(slice(l, d - r if r > 0 else None)
                   for d, (l, r) in zip(x.shape, pad_width))
    return x[slices]


if __name__ == "__main__":
    key = jax.random.PRNGKey(0)
    k1, k2 = jax.random.split(key)

    # 1) Narrow-interior case (demo shape): forced through the Pallas
    #    VMEM-staged path.  (2, 6, 20, 20) -> (2, 4, 16, 16).
    pad_width1 = ((0, 0), (1, 1), (2, 2), (2, 2))
    x1 = jax.random.normal(k1, (2, 6, 20, 20), dtype=jnp.float32)
    mod1 = UnpadNd(pad_width1, value=0.0)
    out1 = jax.block_until_ready(mod1(x1, force_pallas=True))
    ref1 = unpad_reference(x1, pad_width1)
    assert out1.shape == (2, 4, 16, 16), out1.shape
    assert out1.dtype == ref1.dtype
    assert jnp.array_equal(out1, ref1), "VMEM-staged UnpadNd does not match reference"

    # 2) Wide-interior case: forced through the chunked concurrent-DMA path.
    #    Padding only on dim 1; trailing dims collapse so the inner contiguous
    #    run is 8 KiB.  (8, 6, 16, 32) -> (8, 4, 16, 32).
    pad_width2 = ((0, 0), (1, 1), (0, 0), (0, 0))
    x2 = jax.random.normal(k2, (8, 6, 16, 32), dtype=jnp.float32)
    mod2 = UnpadNd(pad_width2, value=0.0)
    out2 = jax.block_until_ready(mod2(x2, force_pallas=True))
    ref2 = unpad_reference(x2, pad_width2)
    assert out2.shape == (8, 4, 16, 32), out2.shape
    assert jnp.array_equal(out2, ref2), "DMA-path UnpadNd does not match reference"

    # 3) Default dispatch on a tiny input takes the XLA-slice fast path.
    out3 = jax.block_until_ready(mod1(x1))
    assert jnp.array_equal(out3, ref1), "fast-path UnpadNd does not match reference"

    print("KERNEL_OK")
</pallas_src>

<mosaic_0001>
module attributes {stable_mosaic.version = 11 : i64} {
  func.func @_unpad_vmem_kernel(%arg0: i32, %arg1: i32, %arg2: memref<1x1x20x20xf32, #tpu.memory_space<vmem>>, %arg3: memref<1x1x16x16xf32, #tpu.memory_space<vmem>>) attributes {dimension_semantics = [#tpu.dimension_semantics<parallel>, #tpu.dimension_semantics<parallel>], iteration_bounds = array<i64: 2, 4>, scalar_prefetch = 0 : i64, scratch_operands = 0 : i64, tpu.core_type = #tpu.core_type<tc>, window_params = [{transform_indices = @transform_0, window_bounds = array<i64: 1, 1, 20, 20>}, {transform_indices = @transform_1, window_bounds = array<i64: 1, 1, 16, 16>}]} {
    %c0 = arith.constant 0 : index
    %c0_0 = arith.constant 0 : index
    %c2 = arith.constant 2 : index
    %c2_1 = arith.constant 2 : index
    %0 = vector.load %arg2[%c0, %c0_0, %c2, %c2_1] : memref<1x1x20x20xf32, #tpu.memory_space<vmem>>, vector<1x1x16x16xf32>
    %c0_2 = arith.constant 0 : index
    %c0_3 = arith.constant 0 : index
    %c0_4 = arith.constant 0 : index
    %c0_5 = arith.constant 0 : index
    %1 = vector.load %arg3[%c0_2, %c0_3, %c0_4, %c0_5] : memref<1x1x16x16xf32, #tpu.memory_space<vmem>>, vector<1x1x16x16xf32>
    tpu.vector_store %arg3[%c0_2, %c0_3, %c0_4, %c0_5], %0 {strides = array<i32>} : memref<1x1x16x16xf32, #tpu.memory_space<vmem>>, vector<1x1x16x16xf32>,
    return
  }
  func.func @transform_0(%arg0: i32, %arg1: i32) -> (i32, i32, i32, i32) {
    %c0_i32 = arith.constant 0 : i32
    %0 = arith.addi %arg0, %c0_i32 : i32
    %c1_i32 = arith.constant 1 : i32
    %1 = arith.addi %arg1, %c1_i32 : i32
    %c0_i32_0 = arith.constant 0 : i32
    %c0_i32_1 = arith.constant 0 : i32
    %c0_i32_2 = arith.constant 0 : i32
    return %0, %1, %c0_i32_0, %c0_i32_1 : i32, i32, i32, i32
  }
  func.func @transform_1(%arg0: i32, %arg1: i32) -> (i32, i32, i32, i32) {
    %c0_i32 = arith.constant 0 : i32
    %c0_i32_0 = arith.constant 0 : i32
    %c0_i32_1 = arith.constant 0 : i32
    return %arg0, %arg1, %c0_i32, %c0_i32_0 : i32, i32, i32, i32
  }
}

</mosaic_0001>

<bundles_post_ra>
// kernel: tpu_custom_call.1
= control target key start
LH: loop header
LB: loop body
LE: loop exit
PB: predicated region body
PF: predicated region fallthrough
CT: control target
= control target key end

     0   :  { %6 = vsyncpa [#allocation3], 0  ;;  %s602_s0 = inlined_call_operand.vmem [shape: f32[2,6,20,20], index: 0, kind: input, shape index: {}]   ;;  %s603_s1 = inlined_call_operand.hbm [shape: f32[2,4,16,16], index: 1, kind: output, shape index: {}]  }
   0x1   :  { %8 = vsyncpa [#allocation3 + $0x1], 0  ;;  %s463_s6 = smov 0   ;;  %s465_s7 = smov 0  }
   0x2   :  { %s467_s8 = smov 0   ;;  %s469_s9 = smov 0  }
   0x3   :  { %s471_s10 = smov 0   ;;  %s473_s11 = smov 0  }
   0x4   :  { %s475_s12 = smov 0   ;;  %s477_s13 = smov 0  }
   0x5 LB: > { %s264_s14 = sadd.s32 4294967295, %s447_s13   ;;  %s265_s15 = sadd.s32 4294967294, %s447_s13   ;;  %s447_s13 = sphi %s477_s13, %s14_s13   ;;  %s443_s12 = sphi %s475_s12, %s612_s12   ;;  %s439_s11 = sphi %s473_s11, %s611_s11   ;;  %s435_s10 = sphi %s471_s10, %s610_s10   ;;  %s431_s9 = sphi %s469_s9, %s609_s9   ;;  %s427_s8 = sphi %s467_s8, %s608_s8   ;;  %s423_s7 = sphi %s465_s7, %s607_s7   ;;  %s419_s6 = sphi %s463_s6, %s606_s6  }
   0x6   : > { %s23_s16 = sadd.s32 1, %s439_s11  ;;  %s26_s17 = sadd.s32 1, %s443_s12 }
   0x7   : > { %p24_p0 = scmp.ge.s32.totalorder %s23_s16, 4  ;;  %p75_p1 = scmp.ne.s32.totalorder %s427_s8, %s423_s7 }
   0x8   : > { %p76_p2 = scmp.eq.s32.totalorder %s264_s14, 7  ;;  %p81_p5 = scmp.ne.s32.totalorder %s423_s7, %s419_s6 }
   0x9   : > { %s614_s16 = smov (%p24_p0, %s23_s16), 0  ;;  %s616_s17 = smov (!%p24_p0, %s26_s17), %s443_s12 }
   0xa   : > { %s61_s18 = ssub.s32 %s439_s11, %s614_s16  ;;  %p514_p3 = por %p76_p2, %p75_p1 }
   0xb   : > { %p28_p4 = scmp.ge.s32.totalorder %s616_s17, 2  ;;  %p82_p6 = scmp.eq.s32.totalorder %s265_s15, 7 }
   0xc   : > { %p268_p7 = scmp.ge.s32.totalorder %s447_s13, 1  ;;  %p114_p9 = scmp.lt.s32.totalorder %s447_s13, 9 }
   0xd   : > { %s618_s17 = smov (%p28_p4, %s616_s17), 0  ;;  %p523_p8 = por %p82_p6, %p81_p5 }
   0xe   : > { %s60_s21 = ssub.s32 %s443_s12, %s618_s17  ;;  %s65_s22 = sadd.s32 1, %s427_s8 }
   0xf   : > { %s62_s23 = sor.u32 %s61_s18, %s60_s21  ;;  %p115_p10 = pnand %p268_p7, %p114_p9 }
  0x10   : > { %p63_p11 = scmp.eq.s32.totalorder %s62_s23, 0  ;;  %s139_s25 = sadd.s32 (!%p115_p10), 1, %s431_s9  ;;  %vm160_vm0 = vcmask (!%p115_p10), 130048  }
  0x11   : > { %118 = sbr.rel (%p115_p10) target bundleno = 167 (0xa7), region = 24  ;;  %p140_p12 = scmp.lt.s32.totalorder (!%p115_p10), %s435_s10, 1 }
  0x12   : > { %s532_s24 = scalar_select %p63_p11, %s427_s8, %s65_s22  }
  0x13   : > { %p142_p13 = scmp.lt.s32.totalorder (!%p115_p10), %s139_s25, 5  ;;  %s449_s5 = smov (!%p115_p10), 126  }
  0x14   : > { %s136_s14 = sand.u32 (!%p115_p10), 1, %s423_s7   ;;  %s272_s15 = sshll.u32 (!%p115_p10), %s431_s9, 1 }
  0x15   : > { %s273_s18 = sshll.u32 (!%p115_p10), %s435_s10, 3  ;;  %s269_s21 = sshll.u32 (!%p115_p10), %s136_s14, 4 }
  0x16   : > { %s176_s22 = sadd.s32 (!%p115_p10), %s273_s18, %s272_s15  ;;  %s138_s23 = scalar_lea.vmem (!%p115_p10), [#allocation2], %s269_s21 }
  0x17   : > { %s550_s9 = scalar_lea.sflag (!%p115_p10), [#allocation3], %s136_s14 }
  0x18   : > { %s141_s26 = scalar_select %p140_p12, %s435_s10, 1 }
  0x19   : > { %s620_s25 = smov (!%p142_p13, %s139_s25), 5 }
  0x1a   : > { %s278_s27 = smul.u32 18, %s141_s26  ;;  %s274_s26 = sshll.u32 %s176_s22, 7 }
  0x1b   : > { %s277_s28 = smul.u32 3, %s620_s25  ;;  %s179_s25 = sshll.u32 %s138_s23, 4  ;;  %s543_s25 = int_to_ptr.vmem [resolvable:$true] %s179_s25 }
  0x1c   : > { %s353_s10 = scalar_lea.vmem %s543_s25, 256 }
  0x1d   : > { %s146_s29 = sadd.s32 %s278_s27, %s277_s28  ;;  %p354_p0 = scmp.ne.s32.totalorder %s543_s25, %s353_s10 }
  0x1e   : > { %s270_s30 = sshll.u32 %s146_s29, 3  ;;  %s548_s29 = scalar_lea.hbm %s603_s1, %s274_s26 }
  0x1f   : > { %s148_s4 = scalar_lea.vmem %s602_s0, %s270_s30  ;;  %p355_p1 = pnand %p354_p0, %p514_p3 }
  0x20   : > { %v150_v0 = vld [vmem:[%s148_s4 + $0x2] sm:$0xff]  ;;  %v151_v1 = vld [vmem:[%s148_s4 + $0xa] sm:$0xff]  ;;  %s450_s30 = smov [#allocation2]  }
  0x21   : > { %154 = vrot.lane.b32.xlu0 %v150_v0, %s449_s5  ;;  %p356_p2 = pneg %p355_p1  ;;  %s357_s2 = sshll.u32 %s450_s30, 4  ;;  %s358_s2 = int_to_ptr.vmem [resolvable:$false] %s357_s2 }
  0x22   : > { %s359_s3 = scalar_lea.vmem %s358_s2, 512  ;;  %p360_p4 = scmp.lt.s32.totalorder %s543_s25, %s358_s2 }
  0x23   : > { %p361_p5 = scmp.lt.s32.totalorder %s359_s3, %s353_s10 }
  0x25   : > { %156 = vrot.lane.b32.xlu0 %v151_v1, %s449_s5  ;;  %p362_p6 = por %p361_p5, %p360_p4 }
  0x27   : > { %p363_p7 = pnand %p362_p6, %p356_p2 }
  0x93   : > { %v155_v2 = vpop.permute.xlu0 %154 }
  0x94   : > { %161 = vst.msk [vmem:[%s138_s23] sm:$0xff] %vm160_vm0, %v155_v2 }
  0x97   : > { %v157_v3 = vpop.permute.xlu0 %156 }
  0x98   : > { %162 = vst.msk [vmem:[%s138_s23 + $0x8] sm:$0xff] %vm160_vm0, %v157_v3 }
  0x99   : > { %366 = shalt.err (!%p363_p7)
}
  0x9a   : > { %s367_s4 = scalar_lea.hbm %s548_s29, 256  ;;  %s371_s15 = scalar_lea.hbm %s603_s1, 2048 }
  0x9b   : > { %p368_p9 = scmp.ne.s32.totalorder %s548_s29, %s367_s4  ;;  %p372_p12 = scmp.lt.u32.totalorder %s548_s29, %s603_s1 }
  0x9c   : > { %p373_p13 = scmp.lt.u32.totalorder %s371_s15, %s367_s4  ;;  %p375_p1 = scmp.lt.u32.totalorder %s367_s4, %s548_s29 }
  0x9d   : > { %p369_p10 = pnand %p368_p9, %p514_p3 }
  0x9e   : > { %p374_p0 = por %p373_p13, %p372_p12 }
  0x9f   : > { %p370_p11 = pneg %p369_p10 }
  0xa0   : > { %p376_p2 = por %p375_p1, %p374_p0 }
  0xa2   : > { %p377_p4 = pnand %p376_p2, %p370_p11 }
  0xa4   : > { %380 = shalt.err (!%p377_p4)
}
  0xa5   : > { %s451_s22 = smov 128   ;;  %s452_s23 = smov 8  }
  0xa6   : > { %279 = dma.vmem_to_hbm [thread:$0]  (%p514_p3), %s543_s25, 256, %s548_s29, %s550_s9, %s451_s22, %s451_s22, %s452_s23  }
  0xa7 PF: > { %p285_p5 = scmp.ge.s32.totalorder %s447_s13, 2  ;;  %s194_s26 = sand.u32 1, %s419_s6  }
  0xa8   : > { %s195_s27 = scalar_lea.sflag [#allocation3], %s194_s26 }
  0xa9   : > { %p282_p6 = pnand %p285_p5, %p523_p8 }
  0xab   : > { %414 = dma.done.wait (!%p282_p6), %s195_s27, 256  }
  0xac   : > { %416 = vsyncadd (!%p282_p6), %s195_s27, 4294967040  ;;  %s14_s13 = sadd.s32 1, %s447_s13   ;;  %s606_s6 = smov %s423_s7 }
  0xad   : > { %p11_p7 = scmp.ge.s32.totalorder %s14_s13, 10   ;;  %s607_s7 = smov %s427_s8 }
  0xae   : > { %s608_s8 = smov %s532_s24  ;;  %s609_s9 = smov %s439_s11 }
  0xaf   : > { %s610_s10 = smov %s443_s12  ;;  %s611_s11 = smov %s614_s16 }
  0xb0   : > { %s612_s12 = smov %s618_s17  ;;  %13 = sbr.rel (!%p11_p7) target bundleno = 5 (0x5), region = 59 }
  0xb7   :  { %200 = vsyncpa [#allocation3], 1 }
  0xb8   :  { %202 = vsyncpa [#allocation3 + $0x1], 1 }

</bundles_post_ra>
